<compile_context>
chip_gen: v7x
topology: tpu7x:2x2x1
jax: 0.10.0
libtpu: 0.0.40
codegen_flags: <defaults>
</compile_context>

<pallas_src>
import jax
import jax.numpy as jnp
from jax.experimental import pallas as pl
from jax.experimental.pallas import tpu as pltpu

LANE = 128


def _round_up(x, m):
    return (x + m - 1) // m * m


def _vmem_capacity_bytes():
    try:
        return int(pltpu.get_tpu_info().vmem_capacity_bytes)
    except Exception:
        return 128 * 1024 * 1024  # v5e/v6e default


def _compute_dtype():
    # bf16 VPU math on v6e/v7x (native bf16 VALU); f32 on older generations.
    try:
        kind = jax.devices()[0].device_kind.lower()
    except Exception:
        kind = ""
    if any(t in kind for t in ("v2", "v3", "v4", "v5")):
        return jnp.float32
    return jnp.bfloat16


def _make_kernel(Ht, W2, Cp, cdt):
    def kernel(x_ref, scale_ref, bias_ref, w_ref, o_ref):
        # x_ref    : (1, Ht*W2, 2*Cp) bf16   width pair packed on the lane dim
        # scale_ref: (1, 2*Cp) cdt           folded BN scale (even|odd column)
        # bias_ref : (1, 2*Cp) cdt           folded BN bias
        # w_ref    : (Cp, Coutp) bf16        1x1 conv weight, pre-scaled by 0.25
        # o_ref    : (1, (Ht//2)*W2, Coutp)
        x = x_ref[0].astype(cdt)
        # BN (eval, folded) + ReLU on the VPU.
        r = jnp.maximum(x * scale_ref[...] + bias_ref[...], 0.0)   # (Ht*W2, 2Cp)
        # 2x2 average pool BEFORE the conv (0.25 folded into w_ref).
        rw = r[:, :Cp] + r[:, Cp:]                                  # width pair (lanes)
        rh = rw.reshape(Ht // 2, 2, W2, Cp)                         # height pair
        pooled = (rh[:, 0] + rh[:, 1]).reshape((Ht // 2) * W2, Cp)
        # Single MXU matmul at pooled resolution, bf16 in / f32 accumulate,
        # stored straight into the flattened (sublane/lane dense) output block.
        y = jnp.dot(pooled.astype(jnp.bfloat16), w_ref[...],
                    preferred_element_type=jnp.float32)
        o_ref[0] = y.astype(o_ref.dtype)
    return kernel


def _pick_row_tile(N, H, W2, Cp, Coutp, cdt_bytes, vmem_bytes):
    """Largest even divisor Ht of H whose pipeline buffers *and* in-kernel
    temporaries fit a generation-aware VMEM budget, with 8-aligned sublanes."""
    budget = (80 << 20) if vmem_bytes >= (96 << 20) else (26 << 20)

    def aligned(ht):
        # Flattened input/output blocks need an 8-aligned (or full) sublane dim.
        return ht == H or (ht * W2) % 16 == 0

    def fits(ht):
        in_blk = ht * W2 * 2 * Cp * 2                    # bf16 input block
        out_blk = (ht // 2) * W2 * Coutp * 4             # f32 output block
        temps = (ht * W2 * 2 * Cp + ht * W2 * Cp
                 + (ht // 2) * W2 * Cp) * cdt_bytes      # r, rw, pooled
        temps += (ht // 2) * W2 * Cp * 2 + out_blk       # bf16 matmul in + f32 y
        fixed = 2 * Cp * Coutp * 2 + 4 * (2 * Cp) * cdt_bytes  # weight + scale/bias (x2 buf)
        return 2 * (in_blk + out_blk) + temps + fixed <= budget

    best = None
    for c in range(2, H + 1, 2):
        if H % c or not aligned(c) or not fits(c):
            continue
        if N == 1 and c == H and H > 2 and best is not None:
            continue  # keep >=2 row tiles so both v7x TensorCores get work
        best = c
    if best is None:  # nothing fits the budget: smallest aligned even divisor
        for c in range(2, H + 1, 2):
            if H % c == 0 and aligned(c):
                best = c
                break
    if best is None:
        best = H
    return best


def transition_forward(x_nchw, gamma, beta, running_mean, running_var, conv_w,
                       eps=1e-5):
    """x_nchw: (N, Cin, H, W) f32.  conv_w: (Cout, Cin, 1, 1).
    Returns (N, Cout, H//2, W//2) in x dtype."""
    N, C, H, W = x_nchw.shape
    Cout = conv_w.shape[0]
    assert H % 2 == 0 and W % 2 == 0, "AvgPool2d(2,2) path assumes even H and W"
    W2 = W // 2

    Cp = _round_up(C, LANE)
    Coutp = _round_up(Cout, LANE)
    cdt = _compute_dtype()
    cdt_bytes = jnp.dtype(cdt).itemsize
    vmem_bytes = _vmem_capacity_bytes()

    # Fold BN (eval) into per-channel scale/bias; padded channel lanes are zero
    # in scale/bias/weight, so they contribute nothing.
    scale = gamma / jnp.sqrt(running_var + eps)               # (C,)
    bias = beta - running_mean * scale                        # (C,)
    scale_p = jnp.zeros((Cp,), jnp.float32).at[:C].set(scale)
    bias_p = jnp.zeros((Cp,), jnp.float32).at[:C].set(bias)
    scale2 = jnp.concatenate([scale_p, scale_p]).reshape(1, 2 * Cp).astype(cdt)
    bias2 = jnp.concatenate([bias_p, bias_p]).reshape(1, 2 * Cp).astype(cdt)

    # 1x1 conv weight with the 2x2 avg-pool 0.25 folded in, padded, bf16.
    w = conv_w[:, :, 0, 0].T * 0.25                           # (C, Cout) f32
    w_p = jnp.zeros((Cp, Coutp), jnp.float32).at[:C, :Cout].set(w).astype(jnp.bfloat16)

    # NCHW -> NHWC with the bf16 cast fused in (halves kernel input DMA bytes),
    # zero-pad channels, then a free contiguous reshape that packs each width
    # pair onto the lane dim and flattens (H, W/2) into one 8-aligned sublane dim.
    x = jnp.transpose(x_nchw, (0, 2, 3, 1)).astype(jnp.bfloat16)   # (N, H, W, C)
    if Cp != C:
        x = jnp.pad(x, ((0, 0), (0, 0), (0, 0), (0, Cp - C)))
    x3 = x.reshape(N, H * W2, 2 * Cp)                              # (N, H*W2, 2Cp)

    Ht = _pick_row_tile(N, H, W2, Cp, Coutp, cdt_bytes, vmem_bytes)
    grid = (N, H // Ht)
    Mo = (H // 2) * W2          # flattened pooled spatial size
    Mo_blk = (Ht // 2) * W2

    cost = pl.CostEstimate(
        flops=2 * N * Mo * Cp * Coutp + 6 * N * H * W2 * 2 * Cp,
        transcendentals=0,
        bytes_accessed=(N * H * W2 * 2 * Cp * 2          # bf16 activations in
                        + N * Mo * Coutp * 4             # f32 out
                        + Cp * Coutp * 2                 # weight
                        + 2 * 2 * Cp * cdt_bytes * 2),   # scale/bias
    )

    out3 = pl.pallas_call(
        _make_kernel(Ht, W2, Cp, cdt),
        out_shape=jax.ShapeDtypeStruct((N, Mo, Coutp), x_nchw.dtype),
        grid_spec=pltpu.PrefetchScalarGridSpec(
            num_scalar_prefetch=0,
            grid=grid,
            in_specs=[
                pl.BlockSpec((1, Ht * W2, 2 * Cp), lambda n, h: (n, h, 0)),
                pl.BlockSpec((1, 2 * Cp), lambda n, h: (0, 0)),
                pl.BlockSpec((1, 2 * Cp), lambda n, h: (0, 0)),
                pl.BlockSpec((Cp, Coutp), lambda n, h: (0, 0)),
            ],
            out_specs=pl.BlockSpec((1, Mo_blk, Coutp), lambda n, h: (n, h, 0)),
        ),
        compiler_params=pltpu.CompilerParams(
            dimension_semantics=("parallel", "parallel"),
            vmem_limit_bytes=min(vmem_bytes * 3 // 4, 96 * 1024 * 1024),
        ),
        cost_estimate=cost,
    )(x3, scale2, bias2, w_p)

    # Unflatten (free, contiguous), drop Cout padding, back to NCHW for the spec.
    out = out3.reshape(N, H // 2, W2, Coutp)[..., :Cout]
    return jnp.transpose(out, (0, 3, 1, 2))


def reference_forward(x, gamma, beta, mean, var, conv_w, eps=1e-5):
    """Pure-JAX f32 reference replicating the PyTorch module (eval-mode BN)."""
    xn = (x - mean[None, :, None, None]) * (
        gamma[None, :, None, None] / jnp.sqrt(var[None, :, None, None] + eps)
    ) + beta[None, :, None, None]
    r = jnp.maximum(xn, 0.0)
    y = jnp.einsum("nchw,oc->nohw", r, conv_w[:, :, 0, 0])
    N, O, H, W = y.shape
    return y.reshape(N, O, H // 2, 2, W // 2, 2).mean(axis=(3, 5))


if __name__ == "__main__":
    N, Cin, H, W = 2, 4, 16, 16
    Cout = 8

    key = jax.random.PRNGKey(0)
    kx, kg, kb, km, kv, kw = jax.random.split(key, 6)

    x = jax.random.normal(kx, (N, Cin, H, W), dtype=jnp.float32)
    gamma = jax.random.normal(kg, (Cin,), dtype=jnp.float32) * 0.1 + 1.0
    beta = jax.random.normal(kb, (Cin,), dtype=jnp.float32) * 0.1
    running_mean = jax.random.normal(km, (Cin,), dtype=jnp.float32) * 0.1
    running_var = jax.random.uniform(kv, (Cin,), dtype=jnp.float32,
                                     minval=0.5, maxval=1.5)
    conv_w = jax.random.normal(kw, (Cout, Cin, 1, 1), dtype=jnp.float32) * 0.5

    out = transition_forward(x, gamma, beta, running_mean, running_var, conv_w)
    out = jax.block_until_ready(out)

    ref = reference_forward(x, gamma, beta, running_mean, running_var, conv_w)
    assert out.shape == (N, Cout, H // 2, W // 2), out.shape
    # Activations are stored/loaded in bf16 and the MXU runs bf16 inputs with
    # f32 accumulation -> compare against the f32 reference with a bf16 tolerance.
    assert jnp.allclose(out, ref, atol=5e-2, rtol=5e-2), "mismatch vs reference"

    print("KERNEL_OK")
</pallas_src>

<mosaic_0001>
module attributes {stable_mosaic.version = 11 : i64} {
  func.func @kernel(%arg0: i32, %arg1: i32, %arg2: memref<1x128x256xbf16, #tpu.memory_space<vmem>>, %arg3: memref<1x256xbf16, #tpu.memory_space<vmem>>, %arg4: memref<1x256xbf16, #tpu.memory_space<vmem>>, %arg5: memref<128x128xbf16, #tpu.memory_space<vmem>>, %arg6: memref<1x64x128xf32, #tpu.memory_space<vmem>>) attributes {dimension_semantics = [#tpu.dimension_semantics<parallel>, #tpu.dimension_semantics<parallel>], iteration_bounds = array<i64: 2, 1>, scalar_prefetch = 0 : i64, scratch_operands = 0 : i64, tpu.core_type = #tpu.core_type<tc>, window_params = [{transform_indices = @transform_0, window_bounds = array<i64: 1, 128, 256>}, {pipeline_mode = #tpu.pipeline_mode<synchronous>, transform_indices = @transform_1, window_bounds = array<i64: 1, 256>}, {pipeline_mode = #tpu.pipeline_mode<synchronous>, transform_indices = @transform_2, window_bounds = array<i64: 1, 256>}, {pipeline_mode = #tpu.pipeline_mode<synchronous>, transform_indices = @transform_3, window_bounds = array<i64: 128, 128>}, {transform_indices = @transform_4, window_bounds = array<i64: 1, 64, 128>}]} {
    %c0 = arith.constant 0 : index
    %c0_0 = arith.constant 0 : index
    %c0_1 = arith.constant 0 : index
    %0 = vector.load %arg2[%c0, %c0_0, %c0_1] : memref<1x128x256xbf16, #tpu.memory_space<vmem>>, vector<1x128x256xbf16>
    %1 = vector.shape_cast %0 : vector<1x128x256xbf16> to vector<128x256xbf16>
    %c0_2 = arith.constant 0 : index
    %c0_3 = arith.constant 0 : index
    %2 = vector.load %arg3[%c0_2, %c0_3] : memref<1x256xbf16, #tpu.memory_space<vmem>>, vector<1x256xbf16>
    %3 = vector.broadcast %2 : vector<1x256xbf16> to vector<128x256xbf16>
    %4 = arith.mulf %1, %3 : vector<128x256xbf16>
    %c0_4 = arith.constant 0 : index
    %c0_5 = arith.constant 0 : index
    %5 = vector.load %arg4[%c0_4, %c0_5] : memref<1x256xbf16, #tpu.memory_space<vmem>>, vector<1x256xbf16>
    %6 = vector.broadcast %5 : vector<1x256xbf16> to vector<128x256xbf16>
    %7 = arith.addf %4, %6 : vector<128x256xbf16>
    %cst = arith.constant 0.000000e+00 : bf16
    %8 = vector.broadcast %cst : bf16 to vector<128x256xbf16>
    %9 = arith.maximumf %7, %8 : vector<128x256xbf16>
    %10 = vector.extract_strided_slice %9 {offsets = [0, 0], sizes = [128, 128], strides = [1, 1]} : vector<128x256xbf16> to vector<128x128xbf16>
    %11 = vector.extract_strided_slice %9 {offsets = [0, 128], sizes = [128, 128], strides = [1, 1]} : vector<128x256xbf16> to vector<128x128xbf16>
    %12 = arith.addf %10, %11 : vector<128x128xbf16>
    %13 = vector.shape_cast %12 : vector<128x128xbf16> to vector<8x2x8x128xbf16>
    %14 = vector.extract_strided_slice %13 {offsets = [0, 0, 0, 0], sizes = [8, 1, 8, 128], strides = [1, 1, 1, 1]} : vector<8x2x8x128xbf16> to vector<8x1x8x128xbf16>
    %15 = vector.shape_cast %14 : vector<8x1x8x128xbf16> to vector<8x8x128xbf16>
    %16 = vector.extract_strided_slice %13 {offsets = [0, 1, 0, 0], sizes = [8, 1, 8, 128], strides = [1, 1, 1, 1]} : vector<8x2x8x128xbf16> to vector<8x1x8x128xbf16>
    %17 = vector.shape_cast %16 : vector<8x1x8x128xbf16> to vector<8x8x128xbf16>
    %18 = arith.addf %15, %17 : vector<8x8x128xbf16>
    %19 = vector.shape_cast %18 : vector<8x8x128xbf16> to vector<64x128xbf16>
    %c0_6 = arith.constant 0 : index
    %c0_7 = arith.constant 0 : index
    %20 = vector.load %arg5[%c0_6, %c0_7] : memref<128x128xbf16, #tpu.memory_space<vmem>>, vector<128x128xbf16>
    %cst_8 = arith.constant dense<0.000000e+00> : vector<64x128xf32>
    %21 = tpu.matmul %19, %20, %cst_8 {dimension_numbers = #tpu.dot_dimension_numbers<[1], [0], [0], [1], [0, 0, 1, 1], [], []>} : vector<64x128xbf16>, vector<128x128xbf16>, vector<64x128xf32> -> vector<64x128xf32>
    %c0_9 = arith.constant 0 : index
    %c0_10 = arith.constant 0 : index
    %c0_11 = arith.constant 0 : index
    %22 = vector.load %arg6[%c0_9, %c0_10, %c0_11] : memref<1x64x128xf32, #tpu.memory_space<vmem>>, vector<1x64x128xf32>
    %23 = vector.shape_cast %22 : vector<1x64x128xf32> to vector<64x128xf32>
    %24 = vector.shape_cast %21 : vector<64x128xf32> to vector<1x64x128xf32>
    tpu.vector_store %arg6[%c0_9, %c0_10, %c0_11], %24 {strides = array<i32>} : memref<1x64x128xf32, #tpu.memory_space<vmem>>, vector<1x64x128xf32>,
    return
  }
  func.func @transform_0(%arg0: i32, %arg1: i32) -> (i32, i32, i32) {
    %c0_i32 = arith.constant 0 : i32
    %c0_i32_0 = arith.constant 0 : i32
    return %arg0, %arg1, %c0_i32 : i32, i32, i32
  }
  func.func @transform_1(%arg0: i32, %arg1: i32) -> (i32, i32) {
    %c0_i32 = arith.constant 0 : i32
    %c0_i32_0 = arith.constant 0 : i32
    %c0_i32_1 = arith.constant 0 : i32
    return %c0_i32, %c0_i32_0 : i32, i32
  }
  func.func @transform_2(%arg0: i32, %arg1: i32) -> (i32, i32) {
    %c0_i32 = arith.constant 0 : i32
    %c0_i32_0 = arith.constant 0 : i32
    %c0_i32_1 = arith.constant 0 : i32
    return %c0_i32, %c0_i32_0 : i32, i32
  }
  func.func @transform_3(%arg0: i32, %arg1: i32) -> (i32, i32) {
    %c0_i32 = arith.constant 0 : i32
    %c0_i32_0 = arith.constant 0 : i32
    %c0_i32_1 = arith.constant 0 : i32
    return %c0_i32, %c0_i32_0 : i32, i32
  }
  func.func @transform_4(%arg0: i32, %arg1: i32) -> (i32, i32, i32) {
    %c0_i32 = arith.constant 0 : i32
    %c0_i32_0 = arith.constant 0 : i32
    return %arg0, %arg1, %c0_i32 : i32, i32, i32
  }
}

</mosaic_0001>

<bundles_post_ra>
// kernel: tpu_custom_call.1
= control target key start
LH: loop header
LB: loop body
LE: loop exit
PB: predicated region body
PF: predicated region fallthrough
CT: control target
= control target key end

     0   :  { %9 = vsyncpa [#allocation3], 0  ;;  %s1587_s0 = inlined_call_operand.hbm [shape: bf16[2,128,256], index: 0, kind: input, shape index: {}]   ;;  %s1588_s1 = inlined_call_operand.hbm [shape: bf16[1,256], index: 1, kind: input, shape index: {}]   ;;  %s1589_s2 = inlined_call_operand.hbm [shape: bf16[1,256], index: 2, kind: input, shape index: {}]   ;;  %s1590_s3 = inlined_call_operand.hbm [shape: bf16[128,128], index: 3, kind: input, shape index: {}]   ;;  %s1591_s4 = inlined_call_operand.hbm [shape: f32[2,64,128], index: 4, kind: output, shape index: {}]  }
   0x1   :  { %11 = vsyncpa [#allocation3 + $0x1], 0 }
   0x2   :  { %12 = vsyncpa [#allocation6], 0 }
   0x3   :  { %13 = vsyncpa [#allocation9], 0 }
   0x4   :  { %14 = vsyncpa [#allocation4], 0 }
   0x5   :  { %16 = vsyncpa [#allocation4 + $0x1], 0  ;;  %s1239_s15 = smov 0   ;;  %s1241_s16 = smov 0  }
   0x6   :  { %s1243_s17 = smov 0   ;;  %s1245_s18 = smov 0  }
   0x7   :  { %s1247_s19 = smov 0   ;;  %s1249_s20 = smov 0  }
   0x8 LB: > { %s795_s21 = sadd.s32 4294967295, %s1199_s20   ;;  %s796_s22 = sadd.s32 4294967294, %s1199_s20   ;;  %s1199_s20 = sphi %s1249_s20, %s22_s20   ;;  %s1195_s19 = sphi %s1247_s19, %s1615_s19   ;;  %s1191_s18 = sphi %s1245_s18, %s1614_s18   ;;  %s1187_s17 = sphi %s1243_s17, %s1613_s17   ;;  %s1183_s16 = sphi %s1241_s16, %s1612_s16   ;;  %s1179_s15 = sphi %s1239_s15, %s1611_s15  }
   0x9   : > { %p56_p0 = scmp.ne.s32.totalorder %s1183_s16, %s1179_s15  ;;  %p1273_p1 = scmp.eq.s32.totalorder %s795_s21, 0 }
   0xa   : > { %p1277_p2 = scmp.eq.s32.totalorder %s795_s21, 1  ;;  %p151_p3 = scmp.eq.s32.totalorder %s796_s22, 1 }
   0xb   : > { %s1596_s23 = scalar_select %p1273_p1, 1, 0 }
   0xc   : > { %s1597_s24 = scalar_select %p1277_p2, 1, 0 }
   0xd   : > { %p1283_p4 = por %p1273_p1, %p56_p0  ;;  %p797_p5 = scmp.ge.s32.totalorder %s1199_s20, 1 }
   0xe   : > { %p1288_p6 = por %p151_p3, %p56_p0  ;;  %p158_p7 = scmp.lt.s32.totalorder %s1199_s20, 3 }
   0xf   : > { %s1598_s25 = scalar_select %p1283_p4, 1, 0 }
  0x10   : > { %s1599_s26 = scalar_select %p1288_p6, 1, 0 }
  0x11   : > { %p1293_p8 = pnand %p797_p5, %p158_p7  ;;  %s1201_s28 = smov [#allocation5]  }
  0x12   : > { %s171_s29 = sshll.u32 %s1201_s28, 4  ;;  %s1202_s30 = smov [#allocation7]   ;;  %s172_s29 = int_to_ptr.vmem [resolvable:$true] %s171_s29 }
  0x13   : > { %s1600_s27 = scalar_select %p1293_p8, 1, 0 }
  0x14   : > { %p902_p10 = pneg %p1293_p8  ;;  %s182_s5 = sshll.u32 %s1202_s30, 4  ;;  %s1306_s5 = int_to_ptr.vmem [resolvable:$true] %s182_s5 }
  0x15   : > { %s1203_s7 = smov [#allocation8]   ;;  %s995_s11 = scalar_lea.hbm %s1588_s1, 32 }
  0x16   : > { %p1302_p11 = pnand %p902_p10, %p1273_p1  ;;  %s192_s8 = sshll.u32 %s1203_s7, 4  ;;  %s1308_s8 = int_to_ptr.vmem [resolvable:$true] %s192_s8 }
  0x17   : > { %p996_p12 = scmp.ne.s32.totalorder %s1588_s1, %s995_s11  ;;  %p1002_p5 = scmp.lt.u32.totalorder %s995_s11, %s1588_s1 }
  0x18   : > { %p1318_p13 = pneg %p1302_p11 }
  0x1a   : > { %p998_p0 = pnand %p1318_p13, %p996_p12 }
  0x1c   : > { %p999_p3 = pneg %p998_p0 }
  0x1e   : > { %p1004_p7 = pnand %p1002_p5, %p999_p3 }
  0x20   : > { %1007 = shalt.err (!%p1004_p7)
}
  0x21   : > { %s1008_s28 = scalar_lea.vmem %s172_s29, 32  ;;  %p1016_p1 = scmp.lt.s32.totalorder %s172_s29, %s172_s29 }
  0x22   : > { %p1009_p10 = scmp.ne.s32.totalorder %s172_s29, %s1008_s28  ;;  %p1017_p4 = scmp.lt.s32.totalorder %s1008_s28, %s1008_s28 }
  0x24   : > { %p1011_p9 = pnand %p1009_p10, %p1318_p13  ;;  %p1018_p8 = por %p1017_p4, %p1016_p1 }
  0x26   : > { %p1012_p6 = pneg %p1011_p9 }
  0x28   : > { %p1019_p2 = pnand %p1018_p8, %p1012_p6 }
  0x2a   : > { %1022 = shalt.err (!%p1019_p2)
}
  0x2b   : > { %905 = dma.hbm_to_vmem [thread:$0]  (!%p1302_p11), %s1588_s1, 32, %s172_s29, [#allocation6]  }
  0x2c   : > { %s1023_s11 = scalar_lea.hbm %s1589_s2, 32 }
  0x2d   : > { %p1024_p9 = scmp.ne.s32.totalorder %s1589_s2, %s1023_s11  ;;  %p1030_p2 = scmp.lt.u32.totalorder %s1023_s11, %s1589_s2 }
  0x2f   : > { %p1026_p12 = pnand %p1024_p9, %p1318_p13 }
  0x31   : > { %p1027_p1 = pneg %p1026_p12 }
  0x33   : > { %p1032_p4 = pnand %p1030_p2, %p1027_p1 }
  0x35   : > { %1035 = shalt.err (!%p1032_p4)
}
  0x36   : > { %s1036_s29 = scalar_lea.vmem %s1306_s5, 32  ;;  %p1044_p3 = scmp.lt.s32.totalorder %s1306_s5, %s1306_s5 }
  0x37   : > { %p1037_p6 = scmp.ne.s32.totalorder %s1306_s5, %s1036_s29  ;;  %p1045_p5 = scmp.lt.s32.totalorder %s1036_s29, %s1036_s29 }
  0x39   : > { %p1039_p8 = pnand %p1037_p6, %p1318_p13  ;;  %p1046_p7 = por %p1045_p5, %p1044_p3 }
  0x3b   : > { %p1040_p0 = pneg %p1039_p8 }
  0x3d   : > { %p1047_p10 = pnand %p1046_p7, %p1040_p0 }
  0x3f   : > { %1050 = shalt.err (!%p1047_p10)
}
  0x40   : > { %908 = dma.hbm_to_vmem [thread:$0]  (!%p1302_p11), %s1589_s2, 32, %s1306_s5, [#allocation6]  }
  0x41   : > { %s1051_s10 = scalar_lea.hbm %s1590_s3, 1024 }
  0x42   : > { %p1052_p9 = scmp.ne.s32.totalorder %s1590_s3, %s1051_s10  ;;  %p1058_p2 = scmp.lt.u32.totalorder %s1051_s10, %s1590_s3 }
  0x44   : > { %p1054_p12 = pnand %p1052_p9, %p1318_p13 }
  0x46   : > { %p1055_p1 = pneg %p1054_p12 }
  0x48   : > { %p1060_p4 = pnand %p1058_p2, %p1055_p1 }
  0x4a   : > { %1063 = shalt.err (!%p1060_p4)
}
  0x4b   : > { %s1064_s5 = scalar_lea.vmem %s1308_s8, 1024  ;;  %p1072_p3 = scmp.lt.s32.totalorder %s1308_s8, %s1308_s8 }
  0x4c   : > { %p1065_p6 = scmp.ne.s32.totalorder %s1308_s8, %s1064_s5  ;;  %p1073_p5 = scmp.lt.s32.totalorder %s1064_s5, %s1064_s5 }
  0x4e   : > { %p1067_p8 = pnand %p1065_p6, %p1318_p13  ;;  %p1074_p7 = por %p1073_p5, %p1072_p3 }
  0x50   : > { %p1068_p0 = pneg %p1067_p8 }
  0x52   : > { %p1075_p10 = pnand %p1074_p7, %p1068_p0 }
  0x54   : > { %1078 = shalt.err (!%p1075_p10)
}
  0x55   : > { %s1204_s22 = smov 64   ;;  %s1205_s14 = smov 4  }
  0x56   : > { %911 = dma.hbm_to_vmem [thread:$0]  (!%p1302_p11), %s1590_s3, 1024, %s1308_s8, [#allocation9], %s1204_s22, %s1204_s22, %s1205_s14  }
  0x57   : > { %s43_s30 = sadd.s32 1, %s1187_s17  ;;  %s34_s7 = sadd.s32 1, %s1195_s19 }
  0x58   : > { %p50_p13 = scmp.ne.s32.totalorder %s1187_s17, %s1183_s16  ;;  %p36_p9 = scmp.ge.s32.totalorder %s34_s7, 2 }
  0x59   : > { %p51_p12 = scmp.eq.s32.totalorder %s1199_s20, 0  ;;  %p1603_p1 = scmp.ne.s32.totalorder %s1597_s24, 0 }
  0x5a   : > { %p923_p4 = scmp.lt.s32.totalorder %s1199_s20, 2  ;;  %s1617_s7 = smov (%p36_p9, %s34_s7), 0 }
  0x5b   : > { %p1387_p2 = por %p1603_p1, %p50_p13  ;;  %p52_p6 = por %p51_p12, %p50_p13 }
  0x5c   : > { %s206_s6 = sand.u32 1, %s1187_s17   ;;  %s38_s10 = ssub.s32 %s1195_s19, %s1617_s7 }
  0x5d   : > { %p41_p8 = scmp.eq.s32.totalorder %s38_s10, 0  ;;  %s802_s8 = sshll.u32 %s206_s6, 7 }
  0x5e   : > { %s832_s11 = sshll.u32 %s1195_s19, 11  ;;  %s210_s5 = scalar_lea.vmem [#allocation2], %s802_s8 }
  0x5f   : > { %s1399_s12 = scalar_select %p41_p8, %s1187_s17, %s43_s30  }
  0x60   : > { %s1404_s24 = scalar_lea.hbm %s1587_s0, %s832_s11  ;;  %s220_s22 = sshll.u32 %s210_s5, 4  ;;  %s1406_s22 = int_to_ptr.vmem [resolvable:$true] %s220_s22 }
  0x61   : > { %p1410_p11 = pnand %p923_p4, %p52_p6  ;;  %s1414_s29 = scalar_lea.sflag [#allocation3], %s206_s6 }
  0x62   : > { %s1079_s28 = scalar_lea.hbm %s1404_s24, 2048  ;;  %s1084_s8 = scalar_lea.hbm %s1587_s0, 4096 }
  0x63   : > { %p1080_p0 = scmp.ne.s32.totalorder %s1404_s24, %s1079_s28  ;;  %p1081_p3 = pneg %p1410_p11 }
  0x64   : > { %p1085_p10 = scmp.lt.u32.totalorder %s1404_s24, %s1587_s0  ;;  %p1086_p13 = scmp.lt.u32.totalorder %s1084_s8, %s1079_s28 }
  0x65   : > { %p1082_p5 = pnand %p1081_p3, %p1080_p0  ;;  %p1088_p12 = scmp.lt.u32.totalorder %s1079_s28, %s1404_s24 }
  0x66   : > { %p1087_p9 = por %p1086_p13, %p1085_p10 }
  0x67   : > { %p1083_p7 = pneg %p1082_p5 }
  0x68   : > { %p1089_p1 = por %p1088_p12, %p1087_p9 }
  0x6a   : > { %p1090_p4 = pnand %p1089_p1, %p1083_p7 }
  0x6c   : > { %1093 = shalt.err (!%p1090_p4)
}
  0x6d   : > { %s1094_s6 = scalar_lea.vmem %s1406_s22, 2048  ;;  %s1206_s21 = smov [#allocation2]  }
  0x6e   : > { %p1095_p6 = scmp.ne.s32.totalorder %s1406_s22, %s1094_s6  ;;  %s1099_s5 = sshll.u32 %s1206_s21, 4  ;;  %s1100_s5 = int_to_ptr.vmem [resolvable:$false] %s1099_s5 }
  0x6f   : > { %s1101_s30 = scalar_lea.vmem %s1100_s5, 4096  ;;  %p1102_p5 = scmp.lt.s32.totalorder %s1406_s22, %s1100_s5 }
  0x70   : > { %p1097_p8 = pnand %p1095_p6, %p1081_p3  ;;  %p1103_p10 = scmp.lt.s32.totalorder %s1101_s30, %s1094_s6 }
  0x72   : > { %p1098_p0 = pneg %p1097_p8  ;;  %p1104_p13 = por %p1103_p10, %p1102_p5 }
  0x74   : > { %p1105_p9 = pnand %p1104_p13, %p1098_p0 }
  0x76   : > { %1108 = shalt.err (!%p1105_p9)
}
  0x77   : > { %s1207_s28 = smov 128   ;;  %s1208_s10 = smov 8  }
  0x78   : > { %915 = dma.hbm_to_vmem [thread:$0]  (!%p1410_p11), %s1404_s24, 2048, %s1406_s22, %s1414_s29, %s1207_s28, %s1207_s28, %s1208_s10  }
  0x79   : > { %p1606_p3 = scmp.ne.s32.totalorder %s1600_s27, 0 }
  0x7a   : > { %s1445_s8 = sand.u32 (!%p1606_p3), 1, %s1183_s16   ;;  %p1607_p7 = scmp.ne.s32.totalorder (!%p1606_p3), %s1598_s25, 0 }
  0x7b   : > { %232 = sbr.rel (%p1606_p3) target bundleno = 411 (0x19b), region = 36  ;;  %s806_s11 = sshll.u32 (!%p1606_p3), %s1445_s8, 7 }
  0x7c   : > { %s235_s13 = scalar_lea.sflag (!%p1606_p3), [#allocation3], %s1445_s8  ;;  %s1449_s6 = scalar_lea.vmem (!%p1606_p3), [#allocation2], %s806_s11 }
  0x82   : > { %1162 = dma.done.wait (%p1607_p7), %s235_s13, 2048  }
  0x83   : > { %1164 = vsyncadd (%p1607_p7), %s235_s13, 4294965248  ;;  %p1608_p11 = scmp.ne.s32.totalorder %s1596_s23, 0 }
  0x85   : > { %1166 = dma.done.wait (%p1608_p11), [#allocation6], 64  }
  0x86   : > { %1168 = vsyncadd (%p1608_p11), [#allocation6], 4294967232 }
  0x87   : > { %1170 = dma.done.wait (%p1608_p11), [#allocation9], 1024  }
  0x88   : > { %1172 = vsyncadd (%p1608_p11), [#allocation9], 4294966272  ;;  %v1209_v0 = vmov 1966171168   ;;  %v307_v2 = vlaneseq  ;;  %v987_v3 = vld [vmem:[#allocation8] sm:$0xff]   ;;  %v988_v4 = vld [vmem:[#allocation8 + $0x8] sm:$0xff]  }
  0x89   : > { %v305_v1 = vunpack.c.l.s4 %v1209_v0  ;;  %846 = vmatprep.subr.bf16.mxu0 %v987_v3  ;;  %870 = vmatprep.subr.bf16.mxu1 %v987_v3  ;;  %v989_v7 = vld [vmem:[#allocation8 + $0x10] sm:$0xff]   ;;  %v990_v9 = vld [vmem:[#allocation8 + $0x18] sm:$0xff]   ;;  %v991_v17 = vld [vmem:[#allocation8 + $0x20] sm:$0xff]   ;;  %v1210_v55 = vmov 0   ;;  %s810_s23 = sshll.u32 %s1445_s8, 6  ;;  %s833_s24 = sshll.u32 %s1191_s18, 10 }
  0x8a   : > { %v308_v6 = vshrl.u32 %v307_v2, 7  ;;  %847 = vmatpush3.bf16.msra.mxu0 %v987_v3  ;;  %878 = vmatpush3.bf16.msra.mxu1 %v987_v3  ;;  %v811_v10 = vld.sshfl [vmem:[#allocation5] sm:$0x11 pattern:$0x75316420]  ;;  %v992_v26 = vld [vmem:[#allocation8 + $0x28] sm:$0xff]   ;;  %s1538_s29 = scalar_lea.hbm %s1591_s4, %s833_s24 }
  0x8b   : > { %v306_v5 = vunpack.c.0.s8 %v305_v1  ;;  %848 = vmatprep.subr.bf16.mxu0 %v988_v4  ;;  %871 = vmatprep.subr.bf16.mxu1 %v988_v4  ;;  %v303_v11 = vcombine.high %v811_v10, %v811_v10  ;;  %v813_v14 = vld.sshfl [vmem:[#allocation7] sm:$0x11 pattern:$0x75316420]  ;;  %v279_v29 = vld [vmem:[%s1449_s6 + $0x8] sm:$0xff]  ;;  %v280_v30 = vld [vmem:[%s1449_s6 + $0x10] sm:$0xff] }
  0x8c   : > { %v323_v13 = vsub.s32 0, %v308_v6  ;;  %v363_v15 = vcombine.high %v813_v14, %v813_v14  ;;  %v278_v27 = vld [vmem:[%s1449_s6] sm:$0xff]  ;;  %v281_v31 = vld [vmem:[%s1449_s6 + $0x18] sm:$0xff]  ;;  %v287_v35 = vld [vmem:[%s1449_s6 + $0x48] sm:$0xff]  ;;  %s274_s25 = scalar_lea.vmem [#allocation10], %s810_s23  ;;  %s664_s18 = scalar_lea.sflag [#allocation4], %s1445_s8 }
  0x8d   : > { %v309_v8 = vsub.s32 %v306_v5, %v308_v6  ;;  %v286_v34 = vld [vmem:[%s1449_s6 + $0x40] sm:$0xff]  ;;  %v288_v36 = vld [vmem:[%s1449_s6 + $0x50] sm:$0xff]  ;;  %v289_v38 = vld [vmem:[%s1449_s6 + $0x58] sm:$0xff]  ;;  %s679_s27 = sshll.u32 %s274_s25, 4  ;;  %s1211_s5 = smov [#allocation10]   ;;  %s1533_s27 = int_to_ptr.vmem [resolvable:$true] %s679_s27 }
  0x8e   : > { %849 = vmatpush3.bf16.msra.mxu0 %v988_v4  ;;  %879 = vmatpush3.bf16.msra.mxu1 %v988_v4  ;;  %v993_v39 = vld [vmem:[#allocation8 + $0x30] sm:$0xff]   ;;  %v994_v54 = vld [vmem:[#allocation8 + $0x38] sm:$0xff]   ;;  %s1109_s21 = scalar_lea.vmem %s1533_s27, 1024  ;;  %s1113_s30 = sshll.u32 %s1211_s5, 4  ;;  %s1114_s30 = int_to_ptr.vmem [resolvable:$false] %s1113_s30 }
  0x8f   : > { %850 = vmatprep.subr.bf16.mxu0 %v989_v7  ;;  %872 = vmatprep.subr.bf16.mxu1 %v989_v7  ;;  %v310_v12 = vrot.slane %v811_v10, %v309_v8  ;;  %v370_v16 = vrot.slane %v813_v14, %v309_v8  ;;  %v317_v18 = vrot.slane %v303_v11, %v309_v8  ;;  %p1110_p12 = scmp.ne.s32.totalorder %s1533_s27, %s1109_s21  ;;  %s1115_s28 = scalar_lea.vmem %s1114_s30, 2048 }
  0x90   : > { %v377_v20 = vrot.slane %v363_v15, %v309_v8  ;;  %v283_v8 = vld [vmem:[%s1449_s6 + $0x28] sm:$0xff]  ;;  %p1116_p6 = scmp.lt.s32.totalorder %s1533_s27, %s1114_s30  ;;  %p1117_p8 = scmp.lt.s32.totalorder %s1115_s28, %s1109_s21 }
  0x91   : > { %v319_v19 = vpack.i.b16 %v310_v12, %v310_v12  ;;  %v379_v21 = vpack.i.b16 %v370_v16, %v370_v16  ;;  %v326_v23 = vpack.i.b16 %v317_v18, %v317_v18  ;;  %v285_v18 = vld [vmem:[%s1449_s6 + $0x38] sm:$0xff]  ;;  %p1111_p1 = pnand %p1110_p12, %p1387_p2 }
  0x92   : > { %851 = vmatpush3.bf16.msra.mxu0 %v989_v7  ;;  %880 = vmatpush3.bf16.msra.mxu1 %v989_v7  ;;  %v386_v25 = vpack.i.b16 %v377_v20, %v377_v20  ;;  %v282_v7 = vld [vmem:[%s1449_s6 + $0x20] sm:$0xff]  ;;  %p1118_p0 = por %p1117_p8, %p1116_p6 }
  0x93   : > { %852 = vmatprep.subr.bf16.mxu0 %v990_v9  ;;  %873 = vmatprep.subr.bf16.mxu1 %v990_v9  ;;  %v324_v22 = vrot.slane %v319_v19, %v323_v13  ;;  %v384_v24 = vrot.slane %v379_v21, %v323_v13  ;;  %v331_v28 = vrot.slane %v326_v23, %v323_v13  ;;  %v290_v23 = vld [vmem:[%s1449_s6 + $0x60] sm:$0xff]  ;;  %p1112_p4 = pneg %p1111_p1 }
  0x94   : > { %v391_v32 = vrot.slane %v386_v25, %v323_v13 }
  0x95   : > { %v1467_v33 = vcombine.low %v324_v22, %v331_v28  ;;  %p1119_p5 = pnand %p1118_p0, %p1112_p4 }
  0x96   : > { %853 = vmatpush3.bf16.msra.mxu0 %v990_v9  ;;  %881 = vmatpush3.bf16.msra.mxu1 %v990_v9  ;;  %v1472_v37 = vcombine.low %v384_v24, %v391_v32  ;;  %v292_v32 = vld [vmem:[%s1449_s6 + $0x70] sm:$0xff] }
  0x97   : > { %854 = vmatprep.subr.bf16.mxu0 %v991_v17  ;;  %874 = vmatprep.subr.bf16.mxu1 %v991_v17  ;;  %v338_v40 = vmul.bf16 %v1467_v33, %v278_v27  ;;  %v339_v41 = vmul.bf16 %v1467_v33, %v279_v29  ;;  %v340_v42 = vmul.bf16 %v1467_v33, %v280_v30  ;;  %v291_v27 = vld [vmem:[%s1449_s6 + $0x68] sm:$0xff] }
  0x98   : > { %v341_v43 = vmul.bf16 %v1467_v33, %v281_v31  ;;  %v346_v44 = vmul.bf16 %v1467_v33, %v286_v34  ;;  %v347_v45 = vmul.bf16 %v1467_v33, %v287_v35  ;;  %v348_v46 = vmul.bf16 %v1467_v33, %v288_v36  ;;  %v293_v34 = vld [vmem:[%s1449_s6 + $0x78] sm:$0xff] }
  0x99   : > { %v398_v47 = vadd.bf16 %v1472_v37, %v338_v40  ;;  %v399_v48 = vadd.bf16 %v1472_v37, %v339_v41  ;;  %v400_v49 = vadd.bf16 %v1472_v37, %v340_v42  ;;  %v349_v50 = vmul.bf16 %v1467_v33, %v289_v38 }
  0x9a   : > { %855 = vmatpush3.bf16.msra.mxu0 %v991_v17  ;;  %882 = vmatpush3.bf16.msra.mxu1 %v991_v17  ;;  %v401_v51 = vadd.bf16 %v1472_v37, %v341_v43  ;;  %v406_v52 = vadd.bf16 %v1472_v37, %v346_v44  ;;  %v407_v53 = vadd.bf16 %v1472_v37, %v347_v45  ;;  %v284_v17 = vld [vmem:[%s1449_s6 + $0x30] sm:$0xff] }
  0x9b   : > { %856 = vmatprep.subr.bf16.mxu0 %v992_v26  ;;  %875 = vmatprep.subr.bf16.mxu1 %v992_v26  ;;  %v414_v56 = vmax.bf16 %v1210_v55, %v398_v47  ;;  %v415_v57 = vmax.bf16 %v1210_v55, %v399_v48  ;;  %v416_v58 = vmax.bf16 %v1210_v55, %v400_v49 }
  0x9c   : > { %v417_v59 = vmax.bf16 %v1210_v55, %v401_v51  ;;  %v408_v60 = vadd.bf16 %v1472_v37, %v348_v46  ;;  %v409_v61 = vadd.bf16 %v1472_v37, %v349_v50  ;;  %v422_v62 = vmax.bf16 %v1210_v55, %v406_v52 }
  0x9d   : > { %v446_v63 = vrot.slane %v414_v56, 4  ;;  %v447_v0 = vrot.slane %v415_v57, 4  ;;  %v448_v1 = vrot.slane %v416_v58, 4  ;;  %v423_v2 = vmax.bf16 %v1210_v55, %v407_v53 }
  0x9e   : > { %857 = vmatpush3.bf16.msra.mxu0 %v992_v26  ;;  %883 = vmatpush3.bf16.msra.mxu1 %v992_v26  ;;  %v449_v3 = vrot.slane %v417_v59, 4  ;;  %v424_v4 = vmax.bf16 %v1210_v55, %v408_v60  ;;  %v425_v5 = vmax.bf16 %v1210_v55, %v409_v61  ;;  %v454_v6 = vrot.slane %v422_v62, 4 }
  0x9f   : > { %858 = vmatprep.subr.bf16.mxu0 %v993_v39  ;;  %876 = vmatprep.subr.bf16.mxu1 %v993_v39  ;;  %v478_v9 = vadd.bf16 %v446_v63, %v414_v56  ;;  %v479_v10 = vadd.bf16 %v447_v0, %v415_v57  ;;  %v480_v11 = vadd.bf16 %v448_v1, %v416_v58  ;;  %v455_v12 = vrot.slane %v423_v2, 4 }
  0xa0   : > { %v481_v13 = vadd.bf16 %v449_v3, %v417_v59  ;;  %v456_v14 = vrot.slane %v424_v4, 4  ;;  %v457_v15 = vrot.slane %v425_v5, 4  ;;  %v486_v16 = vadd.bf16 %v454_v6, %v422_v62 }
  0xa1   : > { %v494_v19 = vadd.bf16 %v479_v10, %v478_v9  ;;  %v487_v20 = vadd.bf16 %v455_v12, %v423_v2  ;;  %v342_v21 = vmul.bf16 %v1467_v33, %v282_v7  ;;  %v343_v22 = vmul.bf16 %v1467_v33, %v283_v8 }
  0xa2   : > { %859 = vmatpush3.bf16.msra.mxu0 %v993_v39  ;;  %884 = vmatpush3.bf16.msra.mxu1 %v993_v39  ;;  %v495_v24 = vadd.bf16 %v481_v13, %v480_v11  ;;  %v488_v25 = vadd.bf16 %v456_v14, %v424_v4  ;;  %v489_v26 = vadd.bf16 %v457_v15, %v425_v5 }
  0xa3   : > { %860 = vmatprep.subr.bf16.mxu0 %v994_v54  ;;  %877 = vmatprep.subr.bf16.mxu1 %v994_v54  ;;  %v498_v28 = vadd.bf16 %v487_v20, %v486_v16  ;;  %v344_v29 = vmul.bf16 %v1467_v33, %v284_v17  ;;  %v345_v30 = vmul.bf16 %v1467_v33, %v285_v18 }
  0xa4   : > { %v402_v31 = vadd.bf16 %v1472_v37, %v342_v21  ;;  %v815_v35 = vcombine.low %v494_v19, %v495_v24  ;;  %v499_v36 = vadd.bf16 %v489_v26, %v488_v25  ;;  %v403_v38 = vadd.bf16 %v1472_v37, %v343_v22 }
  0xa5   : > { %v350_v39 = vmul.bf16 %v1467_v33, %v290_v23  ;;  %v404_v40 = vadd.bf16 %v1472_v37, %v344_v29  ;;  %v405_v41 = vadd.bf16 %v1472_v37, %v345_v30  ;;  %v351_v43 = vmul.bf16 %v1467_v33, %v291_v27 }
  0xa6   : > { %861 = vmatpush3.bf16.msra.mxu0 %v994_v54  ;;  %885 = vmatpush3.bf16.msra.mxu1 %v994_v54  ;;  %v418_v42 = vmax.bf16 %v1210_v55, %v402_v31  ;;  %v817_v44 = vcombine.low %v498_v28, %v499_v36  ;;  %v419_v45 = vmax.bf16 %v1210_v55, %v403_v38 }
  0xa7   : > { %862 = vmatprep.mubr.bf16.mxu0 %v815_v35  ;;  %v352_v46 = vmul.bf16 %v1467_v33, %v292_v32  ;;  %v353_v47 = vmul.bf16 %v1467_v33, %v293_v34  ;;  %v420_v48 = vmax.bf16 %v1210_v55, %v404_v40  ;;  %v421_v49 = vmax.bf16 %v1210_v55, %v405_v41 }
  0xa8   : > { %v450_v50 = vrot.slane %v418_v42, 4  ;;  %v410_v51 = vadd.bf16 %v1472_v37, %v350_v39  ;;  %866 = vmatprep.mubr.bf16.mxu1 %v817_v44  ;;  %v451_v52 = vrot.slane %v419_v45, 4  ;;  %v411_v53 = vadd.bf16 %v1472_v37, %v351_v43 }
  0xa9   : > { %v412_v54 = vadd.bf16 %v1472_v37, %v352_v46  ;;  %v413_v56 = vadd.bf16 %v1472_v37, %v353_v47  ;;  %v452_v57 = vrot.slane %v420_v48, 4  ;;  %v453_v58 = vrot.slane %v421_v49, 4 }
  0xaa   : > { %v482_v59 = vadd.bf16 %v450_v50, %v418_v42  ;;  %v426_v33 = vmax.bf16 %v1210_v55, %v410_v51  ;;  %v483_v60 = vadd.bf16 %v451_v52, %v419_v45  ;;  %v427_v61 = vmax.bf16 %v1210_v55, %v411_v53 }
  0xab   : > { %v428_v62 = vmax.bf16 %v1210_v55, %v412_v54  ;;  %v429_v63 = vmax.bf16 %v1210_v55, %v413_v56  ;;  %v484_v0 = vadd.bf16 %v452_v57, %v420_v48  ;;  %v485_v1 = vadd.bf16 %v453_v58, %v421_v49 }
  0xac   : > { %v458_v2 = vrot.slane %v426_v33, 4  ;;  %v496_v3 = vadd.bf16 %v483_v60, %v482_v59  ;;  %v459_v4 = vrot.slane %v427_v61, 4 }
  0xad   : > { %v460_v5 = vrot.slane %v428_v62, 4  ;;  %v461_v37 = vrot.slane %v429_v63, 4  ;;  %v497_v6 = vadd.bf16 %v485_v1, %v484_v0 }
  0xae   : > { %v490_v7 = vadd.bf16 %v458_v2, %v426_v33  ;;  %v491_v8 = vadd.bf16 %v459_v4, %v427_v61 }
  0xaf   : > { %v492_v9 = vadd.bf16 %v460_v5, %v428_v62  ;;  %v493_v10 = vadd.bf16 %v461_v37, %v429_v63  ;;  %v816_v11 = vcombine.low %v496_v3, %v497_v6 }
  0xb0   : > { %v500_v12 = vadd.bf16 %v491_v8, %v490_v7 }
  0xb1   : > { %v501_v13 = vadd.bf16 %v493_v10, %v492_v9  ;;  %863 = vmatmul.mubr.bf16.vlgmr.msra.gmra.mrb[0].mxu0 %v816_v11 }
  0xb3   : > { %v818_v14 = vcombine.low %v500_v12, %v501_v13 }
  0xb5   : > { %867 = vmatmul.mubr.bf16.vlgmr.msra.gmra.mrb[0].mxu1 %v818_v14 }
 0x184   : > { %v864_v55 = vpop.f32.mrb[0].mxu0 }
 0x185   : > { %657 = vst [vmem:[%s274_s25 + $0x10] sm:$0xff] %v864_v55  ;;  %v624_v15 = vpop.f32.mrb[1].mxu0 }
 0x186   : > { %655 = vst [vmem:[%s274_s25] sm:$0xff] %v624_v15  ;;  %v865_v16 = vpop.f32.mrb[2].mxu0 }
 0x187   : > { %658 = vst [vmem:[%s274_s25 + $0x18] sm:$0xff] %v865_v16  ;;  %v627_v18 = vpop.f32.mrb[3].mxu0 }
 0x188   : > { %v868_v17 = vpop.f32.mrb[0].mxu1  ;;  %656 = vst [vmem:[%s274_s25 + $0x8] sm:$0xff] %v627_v18 }
 0x189   : > { %661 = vst [vmem:[%s274_s25 + $0x30] sm:$0xff] %v868_v17  ;;  %v640_v19 = vpop.f32.mrb[1].mxu1 }
 0x18a   : > { %659 = vst [vmem:[%s274_s25 + $0x20] sm:$0xff] %v640_v19  ;;  %v869_v20 = vpop.f32.mrb[2].mxu1 }
 0x18b   : > { %662 = vst [vmem:[%s274_s25 + $0x38] sm:$0xff] %v869_v20  ;;  %v643_v21 = vpop.f32.mrb[3].mxu1 }
 0x18c   : > { %660 = vst [vmem:[%s274_s25 + $0x28] sm:$0xff] %v643_v21 }
 0x18d   : > { %1122 = shalt.err (!%p1119_p5)
}
 0x18e   : > { %s1123_s10 = scalar_lea.hbm %s1538_s29, 1024  ;;  %s1127_s6 = scalar_lea.hbm %s1591_s4, 2048 }
 0x18f   : > { %p1124_p10 = scmp.ne.s32.totalorder %s1538_s29, %s1123_s10  ;;  %p1128_p3 = scmp.lt.u32.totalorder %s1538_s29, %s1591_s4 }
 0x190   : > { %p1129_p7 = scmp.lt.u32.totalorder %s1127_s6, %s1123_s10  ;;  %p1131_p12 = scmp.lt.u32.totalorder %s1123_s10, %s1538_s29 }
 0x191   : > { %p1125_p13 = pnand %p1124_p10, %p1387_p2 }
 0x192   : > { %p1130_p11 = por %p1129_p7, %p1128_p3 }
 0x193   : > { %p1126_p9 = pneg %p1125_p13 }
 0x194   : > { %p1132_p1 = por %p1131_p12, %p1130_p11 }
 0x196   : > { %p1133_p4 = pnand %p1132_p1, %p1126_p9 }
 0x198   : > { %1136 = shalt.err (!%p1133_p4)
}
 0x199   : > { %s1212_s24 = smov 128   ;;  %s1213_s22 = smov 8  }
 0x19a   : > { %900 = dma.vmem_to_hbm [thread:$0]  (%p1387_p2), %s1533_s27, 1024, %s1538_s29, %s664_s18, %s1212_s24, %s1212_s24, %s1213_s22  }
 0x19b PF: > { %s694_s14 = sand.u32 1, %s1179_s15   ;;  %p1609_p6 = scmp.ne.s32.totalorder %s1599_s26, 0 }
 0x19c   : > { %p1610_p8 = scmp.ge.s32.totalorder %s1199_s20, 2  ;;  %s695_s21 = scalar_lea.sflag [#allocation4], %s694_s14 }
 0x19e   : > { %p917_p0 = pnand %p1610_p8, %p1609_p6 }
 0x1a0   : > { %1174 = dma.done.wait (!%p917_p0), %s695_s21, 1024  }
 0x1a1   : > { %1176 = vsyncadd (!%p917_p0), %s695_s21, 4294966272  ;;  %s22_s20 = sadd.s32 1, %s1199_s20   ;;  %s1611_s15 = smov %s1183_s16 }
 0x1a2   : > { %p19_p5 = scmp.ge.s32.totalorder %s22_s20, 4   ;;  %s1612_s16 = smov %s1187_s17 }
 0x1a3   : > { %s1613_s17 = smov %s1399_s12  ;;  %s1614_s18 = smov %s1195_s19 }
 0x1a4   : > { %s1615_s19 = smov %s1617_s7  ;;  %21 = sbr.rel (!%p19_p5) target bundleno = 8 (0x8), region = 93 }
 0x1ab   :  { %700 = vsyncpa [#allocation3], 1 }
 0x1ac   :  { %702 = vsyncpa [#allocation3 + $0x1], 1 }
 0x1ad   :  { %703 = vsyncpa [#allocation6], 1 }
 0x1ae   :  { %704 = vsyncpa [#allocation9], 1 }
 0x1af   :  { %705 = vsyncpa [#allocation4], 1 }
 0x1b0   :  { %707 = vsyncpa [#allocation4 + $0x1], 1 }

</bundles_post_ra>
